<compile_context>
chip_gen: v7x
topology: tpu7x:2x2x1
jax: 0.10.0
libtpu: 0.0.40
codegen_flags: <defaults>
</compile_context>

<pallas_src>
import jax
import jax.numpy as jnp
from jax import lax
from jax.experimental import pallas as pl
from jax.experimental.pallas import tpu as pltpu


def _node_generate_kernel(item_ref, nbr_ref, w_ref, b_ref, o_ref):
    dp = o_ref.shape[-1]
    # concat([item, nbr]) @ W^T  ==  item @ W_item^T + nbr @ W_nbr^T
    # Static ref slices -> zero-cost views; two K=Dp MXU matmuls, f32 acc.
    y = jnp.dot(item_ref[...], w_ref[:dp, :],
                preferred_element_type=jnp.float32)
    y += jnp.dot(nbr_ref[...], w_ref[dp:, :],
                 preferred_element_type=jnp.float32)
    y = jnp.maximum(y + b_ref[...], 0.0)                          # bias + ReLU
    # F.normalize: y / max(||y||_2, 1e-12) == y * rsqrt(max(sum(y^2), 1e-24)).
    sumsq = jnp.sum(y * y, axis=-1, keepdims=True)
    inv = lax.rsqrt(jnp.maximum(sumsq, 1e-24))
    o_ref[...] = (y * inv).astype(o_ref.dtype)


def _round_up(x, m):
    return ((x + m - 1) // m) * m


def _choose_batch_tile(b, dp, vmem_budget_bytes=12 * 1024 * 1024):
    """Largest multiple-of-8 batch tile fitting a conservative VMEM budget."""
    itemsize = 4                                           # f32
    resident = 2 * itemsize * (2 * dp * dp + dp)           # weight + bias buffers
    per_row = itemsize * dp * (3 * 2 + 3)                  # 3 streams x 2 bufs + temps
    tb = (vmem_budget_bytes - resident) // max(per_row, 1)
    tb = max(8, min(1024, tb))
    tb -= tb % 8
    # Never tile coarser than the (sublane-rounded) batch itself.
    return max(8, min(tb, _round_up(b, 8)))


def node_generate(item, neighbor_agg, weight, bias):
    """item, neighbor_agg: (B, D); weight: (D, 2D); bias: (D,) -> (B, D)."""
    B, D = item.shape
    assert neighbor_agg.shape == (B, D)
    assert weight.shape == (D, 2 * D)
    assert bias.shape == (D,)

    dtype = item.dtype
    Dp = _round_up(D, 128)          # lane-dense feature dim
    TB = _choose_batch_tile(B, Dp)  # batch tile (multiple of 8)
    nb = pl.cdiv(B, TB)

    # Host-side prep: W^T padded to (2*Dp, Dp) with zero rows/cols so that
    # item_pad @ Wp[:Dp] + nbr_pad @ Wp[Dp:] == concat @ W^T and the padded
    # output columns are exactly zero (ReLU keeps them zero, so the L2 norm
    # over Dp equals the norm over D).
    w_t = jnp.transpose(weight).astype(dtype)                    # (2D, D)
    w_p = jnp.zeros((2 * Dp, Dp), dtype)
    w_p = w_p.at[:D, :D].set(w_t[:D])                            # item half
    w_p = w_p.at[Dp:Dp + D, :D].set(w_t[D:])                     # neighbor half
    b_p = jnp.zeros((1, Dp), dtype).at[0, :D].set(bias.astype(dtype))

    if Dp != D:
        pad = ((0, 0), (0, Dp - D))
        item_p = jnp.pad(item, pad)
        nbr_p = jnp.pad(neighbor_agg, pad)
    else:
        item_p, nbr_p = item, neighbor_agg

    row_spec = pl.BlockSpec((TB, Dp), lambda i: (i, 0))
    out = pl.pallas_call(
        _node_generate_kernel,
        out_shape=jax.ShapeDtypeStruct((B, Dp), dtype),
        grid_spec=pltpu.PrefetchScalarGridSpec(
            num_scalar_prefetch=0,
            grid=(nb,),
            in_specs=[
                row_spec,                                        # item tile
                row_spec,                                        # neighbor tile
                pl.BlockSpec((2 * Dp, Dp), lambda i: (0, 0)),    # resident W^T
                pl.BlockSpec((1, Dp), lambda i: (0, 0)),         # resident bias
            ],
            out_specs=row_spec,
        ),
        compiler_params=pltpu.CompilerParams(
            dimension_semantics=("parallel",)),
        cost_estimate=pl.CostEstimate(
            flops=2 * B * (2 * Dp) * Dp,
            transcendentals=B,                                   # rsqrt per row
            bytes_accessed=4 * (3 * B * Dp + 2 * Dp * Dp + Dp)),
    )(item_p, nbr_p, w_p, b_p)

    return out[:, :D] if Dp != D else out


if __name__ == "__main__":
    key = jax.random.PRNGKey(0)
    k_item, k_nbr, k_w, k_b = jax.random.split(key, 4)

    B, D = 8, 32  # batch, input_dim

    item = jax.random.normal(k_item, (B, D), dtype=jnp.float32)
    neighbor_agg = jax.random.normal(k_nbr, (B, D), dtype=jnp.float32)

    # Deterministic Linear(2D -> D) parameters (uniform ~ Kaiming-style bound).
    bound = 1.0 / (2 * D) ** 0.5
    weight = jax.random.uniform(k_w, (D, 2 * D), minval=-bound, maxval=bound,
                                dtype=jnp.float32)
    bias = jax.random.uniform(k_b, (D,), minval=-bound, maxval=bound,
                              dtype=jnp.float32)

    out = node_generate(item, neighbor_agg, weight, bias)
    jax.block_until_ready(out)

    # Pure-JAX reference for sanity (matches PyTorch semantics).
    concat = jnp.concatenate([item, neighbor_agg], axis=-1)
    ref = jnp.maximum(concat @ weight.T + bias, 0.0)
    ref = ref / jnp.maximum(
        jnp.sqrt(jnp.sum(ref * ref, axis=-1, keepdims=True)), 1e-12)
    assert out.shape == ref.shape
    assert jnp.allclose(out, ref, atol=1e-5, rtol=1e-5), "mismatch vs reference"

    print("KERNEL_OK")
</pallas_src>

<mosaic_0001>
module attributes {stable_mosaic.version = 11 : i64} {
  func.func @_node_generate_kernel(%arg0: i32, %arg1: memref<8x128xf32, #tpu.memory_space<vmem>>, %arg2: memref<8x128xf32, #tpu.memory_space<vmem>>, %arg3: memref<256x128xf32, #tpu.memory_space<vmem>>, %arg4: memref<1x128xf32, #tpu.memory_space<vmem>>, %arg5: memref<8x128xf32, #tpu.memory_space<vmem>>) attributes {dimension_semantics = [#tpu.dimension_semantics<parallel>], iteration_bounds = array<i64: 1>, scalar_prefetch = 0 : i64, scratch_operands = 0 : i64, tpu.core_type = #tpu.core_type<tc>, window_params = [{transform_indices = @transform_0, window_bounds = array<i64: 8, 128>}, {transform_indices = @transform_1, window_bounds = array<i64: 8, 128>}, {pipeline_mode = #tpu.pipeline_mode<synchronous>, transform_indices = @transform_2, window_bounds = array<i64: 256, 128>}, {pipeline_mode = #tpu.pipeline_mode<synchronous>, transform_indices = @transform_3, window_bounds = array<i64: 1, 128>}, {transform_indices = @transform_4, window_bounds = array<i64: 8, 128>}]} {
    %c0 = arith.constant 0 : index
    %c0_0 = arith.constant 0 : index
    %0 = vector.load %arg1[%c0, %c0_0] : memref<8x128xf32, #tpu.memory_space<vmem>>, vector<8x128xf32>
    %c0_1 = arith.constant 0 : index
    %c0_2 = arith.constant 0 : index
    %1 = vector.load %arg3[%c0_1, %c0_2] : memref<256x128xf32, #tpu.memory_space<vmem>>, vector<128x128xf32>
    %cst = arith.constant dense<0.000000e+00> : vector<8x128xf32>
    %2 = tpu.matmul %0, %1, %cst {dimension_numbers = #tpu.dot_dimension_numbers<[1], [0], [0], [1], [0, 0, 1, 1], [], []>} : vector<8x128xf32>, vector<128x128xf32>, vector<8x128xf32> -> vector<8x128xf32>
    %c0_3 = arith.constant 0 : index
    %c0_4 = arith.constant 0 : index
    %3 = vector.load %arg2[%c0_3, %c0_4] : memref<8x128xf32, #tpu.memory_space<vmem>>, vector<8x128xf32>
    %c128 = arith.constant 128 : index
    %c0_5 = arith.constant 0 : index
    %4 = vector.load %arg3[%c128, %c0_5] : memref<256x128xf32, #tpu.memory_space<vmem>>, vector<128x128xf32>
    %cst_6 = arith.constant dense<0.000000e+00> : vector<8x128xf32>
    %5 = tpu.matmul %3, %4, %cst_6 {dimension_numbers = #tpu.dot_dimension_numbers<[1], [0], [0], [1], [0, 0, 1, 1], [], []>} : vector<8x128xf32>, vector<128x128xf32>, vector<8x128xf32> -> vector<8x128xf32>
    %6 = arith.addf %2, %5 : vector<8x128xf32>
    %c0_7 = arith.constant 0 : index
    %c0_8 = arith.constant 0 : index
    %7 = vector.load %arg4[%c0_7, %c0_8] : memref<1x128xf32, #tpu.memory_space<vmem>>, vector<1x128xf32>
    %8 = vector.broadcast %7 : vector<1x128xf32> to vector<8x128xf32>
    %9 = arith.addf %6, %8 : vector<8x128xf32>
    %cst_9 = arith.constant 0.000000e+00 : f32
    %10 = vector.broadcast %cst_9 : f32 to vector<8x128xf32>
    %11 = arith.maximumf %9, %10 : vector<8x128xf32>
    %12 = arith.mulf %11, %11 : vector<8x128xf32>
    %cst_10 = arith.constant dense<0.000000e+00> : vector<8xf32>
    %13 = vector.multi_reduction <add>, %12, %cst_10 [1] : vector<8x128xf32> to vector<8xf32>
    %14 = vector.shape_cast %13 : vector<8xf32> to vector<8x1xf32>
    %cst_11 = arith.constant 1.000000e-24 : f32
    %15 = vector.broadcast %cst_11 : f32 to vector<8x1xf32>
    %16 = arith.maximumf %14, %15 : vector<8x1xf32>
    %17 = math.rsqrt %16 : vector<8x1xf32>
    %18 = vector.broadcast %17 : vector<8x1xf32> to vector<8x128xf32>
    %19 = arith.mulf %11, %18 : vector<8x128xf32>
    %c0_12 = arith.constant 0 : index
    %c0_13 = arith.constant 0 : index
    %20 = vector.load %arg5[%c0_12, %c0_13] : memref<8x128xf32, #tpu.memory_space<vmem>>, vector<8x128xf32>
    tpu.vector_store %arg5[%c0_12, %c0_13], %19 {strides = array<i32>} : memref<8x128xf32, #tpu.memory_space<vmem>>, vector<8x128xf32>,
    return
  }
  func.func @transform_0(%arg0: i32) -> (i32, i32) {
    %c0_i32 = arith.constant 0 : i32
    %c0_i32_0 = arith.constant 0 : i32
    return %arg0, %c0_i32 : i32, i32
  }
  func.func @transform_1(%arg0: i32) -> (i32, i32) {
    %c0_i32 = arith.constant 0 : i32
    %c0_i32_0 = arith.constant 0 : i32
    return %arg0, %c0_i32 : i32, i32
  }
  func.func @transform_2(%arg0: i32) -> (i32, i32) {
    %c0_i32 = arith.constant 0 : i32
    %c0_i32_0 = arith.constant 0 : i32
    %c0_i32_1 = arith.constant 0 : i32
    return %c0_i32, %c0_i32_0 : i32, i32
  }
  func.func @transform_3(%arg0: i32) -> (i32, i32) {
    %c0_i32 = arith.constant 0 : i32
    %c0_i32_0 = arith.constant 0 : i32
    %c0_i32_1 = arith.constant 0 : i32
    return %c0_i32, %c0_i32_0 : i32, i32
  }
  func.func @transform_4(%arg0: i32) -> (i32, i32) {
    %c0_i32 = arith.constant 0 : i32
    %c0_i32_0 = arith.constant 0 : i32
    return %arg0, %c0_i32 : i32, i32
  }
}

</mosaic_0001>

<bundles_post_ra>
// kernel: tpu_custom_call.1
= control target key start
LH: loop header
LB: loop body
LE: loop exit
PB: predicated region body
PF: predicated region fallthrough
CT: control target
= control target key end

     0   :  { %9 = vsyncpa [#allocation3], 0  ;;  %s620_s0 = inlined_call_operand.hbm [shape: f32[8,128], index: 0, kind: input, shape index: {}]   ;;  %s621_s1 = inlined_call_operand.hbm [shape: f32[8,128], index: 1, kind: input, shape index: {}]   ;;  %s622_s2 = inlined_call_operand.hbm [shape: f32[256,128], index: 2, kind: input, shape index: {}]   ;;  %s623_s3 = inlined_call_operand.vmem [shape: f32[1,128], index: 3, kind: input, shape index: {}]   ;;  %s624_s4 = inlined_call_operand.hbm [shape: f32[8,128], index: 4, kind: output, shape index: {}]  }
   0x1   :  { %10 = vsyncpa [#allocation6], 0 }
   0x2   :  { %11 = vsyncpa [#allocation4], 0  ;;  %s519_s15 = smov [#allocation5]   ;;  %s520_s17 = smov [#allocation2]  }
   0x3   :  { %s28_s16 = sshll.u32 %s519_s15, 4  ;;  %s18_s18 = sshll.u32 %s520_s17, 4  ;;  %s29_s16 = int_to_ptr.vmem [resolvable:$true] %s28_s16  ;;  %s19_s18 = int_to_ptr.vmem [resolvable:$true] %s18_s18 }
   0x4   :  { %s425_s21 = scalar_lea.hbm %s621_s1, 128 }
   0x5   :  { %p426_p0 = scmp.ne.s32.totalorder %s621_s1, %s425_s21  ;;  %p429_p1 = scmp.lt.u32.totalorder %s425_s21, %s621_s1 }
   0x7   :  { %p431_p2 = pnand %p429_p1, %p426_p0 }
   0x9   :  { %434 = shalt.err (!%p431_p2)
}
   0xa   :  { %s435_s26 = scalar_lea.vmem %s29_s16, 128  ;;  %p440_p4 = scmp.lt.s32.totalorder %s29_s16, %s29_s16 }
   0xb   :  { %p436_p3 = scmp.ne.s32.totalorder %s29_s16, %s435_s26  ;;  %p441_p5 = scmp.lt.s32.totalorder %s435_s26, %s435_s26 }
   0xd   :  { %p442_p6 = por %p441_p5, %p440_p4 }
   0xf   :  { %p443_p7 = pnand %p442_p6, %p436_p3 }
  0x11   :  { %446 = shalt.err (!%p443_p7)
}
  0x12   :  { %31 = dma.hbm_to_vmem [thread:$0]  %s621_s1, 128, %s29_s16, [#allocation6]  }
  0x13   :  { %s447_s5 = scalar_lea.hbm %s620_s0, 128 }
  0x14   :  { %p448_p8 = scmp.ne.s32.totalorder %s620_s0, %s447_s5  ;;  %p451_p9 = scmp.lt.u32.totalorder %s447_s5, %s620_s0 }
  0x16   :  { %p453_p10 = pnand %p451_p9, %p448_p8 }
  0x18   :  { %456 = shalt.err (!%p453_p10)
}
  0x19   :  { %s457_s10 = scalar_lea.vmem %s19_s18, 128  ;;  %p462_p12 = scmp.lt.s32.totalorder %s19_s18, %s19_s18 }
  0x1a   :  { %p458_p11 = scmp.ne.s32.totalorder %s19_s18, %s457_s10  ;;  %p463_p13 = scmp.lt.s32.totalorder %s457_s10, %s457_s10 }
  0x1c   :  { %p464_p0 = por %p463_p13, %p462_p12 }
  0x1e   :  { %p465_p1 = pnand %p464_p0, %p458_p11 }
  0x20   :  { %468 = shalt.err (!%p465_p1)
}
  0x21   :  { %21 = dma.hbm_to_vmem [thread:$0]  %s620_s0, 128, %s19_s18, [#allocation3]  }
  0x22   :  { %s521_s12 = smov [#allocation7]   ;;  %s469_s16 = scalar_lea.hbm %s622_s2, 4096 }
  0x23   :  { %s37_s13 = sshll.u32 %s521_s12, 4  ;;  %p470_p2 = scmp.ne.s32.totalorder %s622_s2, %s469_s16  ;;  %s38_s13 = int_to_ptr.vmem [resolvable:$true] %s37_s13 }
  0x24   :  { %p473_p3 = scmp.lt.u32.totalorder %s469_s16, %s622_s2 }
  0x26   :  { %p475_p4 = pnand %p473_p3, %p470_p2 }
  0x28   :  { %478 = shalt.err (!%p475_p4)
}
  0x29   :  { %s479_s22 = scalar_lea.vmem %s38_s13, 4096  ;;  %p484_p6 = scmp.lt.s32.totalorder %s38_s13, %s38_s13 }
  0x2a   :  { %p480_p5 = scmp.ne.s32.totalorder %s38_s13, %s479_s22  ;;  %p485_p7 = scmp.lt.s32.totalorder %s479_s22, %s479_s22 }
  0x2c   :  { %p486_p8 = por %p485_p7, %p484_p6 }
  0x2e   :  { %p487_p9 = pnand %p486_p8, %p480_p5 }
  0x30   :  { %490 = shalt.err (!%p487_p9)
}
  0x31   :  { %s522_s0 = smov 128   ;;  %s523_s18 = smov 8  }
  0x32   :  { %43 = dma.hbm_to_vmem [thread:$0]  %s622_s2, 4096, %s38_s13, [#allocation6], %s522_s0, %s522_s0, %s523_s18  }
  0x33   :  { %513 = dma.done.wait [#allocation3], 128  }
  0x34   :  { %514 = vsyncadd [#allocation3], 4294967168 }
  0x35   :  { %515 = dma.done.wait [#allocation6], 4224  }
  0x36   :  { %516 = vsyncadd [#allocation6], 4294963072  ;;  %v524_v0 = vmov 0.0|0.0   ;;  %vm525_vm0 = vmmov 0   ;;  %v526_v1 = vmov 0.0   ;;  %v73_v2 = vld [vmem:[#allocation7 + $0x80] sm:$0xff] }
  0x37   :  { %366 = vmatprep.subr.bf16.mxu0 %v524_v0  ;;  %390 = vmatprep.subr.bf16.mxu1 %v524_v0  ;;  %v74_v3 = vld [vmem:[#allocation7 + $0x88] sm:$0xff]  ;;  %v56_v4 = vld [vmem:[#allocation7] sm:$0xff]  ;;  %v75_v7 = vld [vmem:[#allocation7 + $0x90] sm:$0xff]  ;;  %s527_s26 = smov [#allocation8]  }
  0x38   :  { %328 = vmatprep.mubr.msk.f32.mxu0 %vm525_vm0, %v526_v1  ;;  %363 = vmatprep.mubr.msk.f32.mxu1 %vm525_vm0, %v526_v1  ;;  %v367_v5 = vpack.c.bf16 %v74_v3, %v73_v2  ;;  %v57_v6 = vld [vmem:[#allocation7 + $0x8] sm:$0xff]  ;;  %v76_v8 = vld [vmem:[#allocation7 + $0x98] sm:$0xff]  ;;  %v58_v10 = vld [vmem:[#allocation7 + $0x10] sm:$0xff]  ;;  %s251_s27 = sshll.u32 %s527_s26, 4  ;;  %s252_s27 = int_to_ptr.vmem [resolvable:$true] %s251_s27 }
  0x39   :  { %v391_v9 = vpack.c.bf16 %v57_v6, %v56_v4  ;;  %v59_v11 = vld [vmem:[#allocation7 + $0x18] sm:$0xff]  ;;  %v370_v12 = vpack.c.bf16 %v76_v8, %v75_v7  ;;  %v77_v14 = vld [vmem:[#allocation7 + $0xa0] sm:$0xff]  ;;  %v78_v15 = vld [vmem:[#allocation7 + $0xa8] sm:$0xff]  ;;  %s491_s28 = scalar_lea.vmem %s252_s27, 128  ;;  %p496_p11 = scmp.lt.s32.totalorder %s252_s27, %s252_s27 }
  0x3a   :  { %368 = vmatpush3.bf16.msra.mxu0 %v367_v5  ;;  %v394_v13 = vpack.c.bf16 %v59_v11, %v58_v10  ;;  %v60_v16 = vld [vmem:[#allocation7 + $0x20] sm:$0xff]  ;;  %v61_v17 = vld [vmem:[#allocation7 + $0x28] sm:$0xff]  ;;  %v373_v18 = vpack.c.bf16 %v78_v15, %v77_v14  ;;  %v79_v20 = vld [vmem:[#allocation7 + $0xb0] sm:$0xff]  ;;  %p492_p10 = scmp.ne.s32.totalorder %s252_s27, %s491_s28  ;;  %p497_p12 = scmp.lt.s32.totalorder %s491_s28, %s491_s28 }
  0x3b   :  { %392 = vmatpush3.bf16.msra.mxu1 %v391_v9  ;;  %369 = vmatprep.subr.bf16.mxu0 %v524_v0  ;;  %v397_v19 = vpack.c.bf16 %v61_v17, %v60_v16  ;;  %v80_v21 = vld [vmem:[#allocation7 + $0xb8] sm:$0xff]  ;;  %v62_v22 = vld [vmem:[#allocation7 + $0x30] sm:$0xff]  ;;  %v81_v26 = vld [vmem:[#allocation7 + $0xc0] sm:$0xff] }
  0x3c   :  { %393 = vmatprep.subr.bf16.mxu1 %v524_v0  ;;  %v63_v23 = vld [vmem:[#allocation7 + $0x38] sm:$0xff]  ;;  %v376_v24 = vpack.c.bf16 %v80_v21, %v79_v20  ;;  %v82_v27 = vld [vmem:[#allocation7 + $0xc8] sm:$0xff]  ;;  %v64_v28 = vld [vmem:[#allocation7 + $0x40] sm:$0xff]  ;;  %p498_p13 = por %p497_p12, %p496_p11 }
  0x3d   :  { %v400_v25 = vpack.c.bf16 %v63_v23, %v62_v22  ;;  %v65_v29 = vld [vmem:[#allocation7 + $0x48] sm:$0xff]  ;;  %v379_v30 = vpack.c.bf16 %v82_v27, %v81_v26  ;;  %v83_v32 = vld [vmem:[#allocation7 + $0xd0] sm:$0xff]  ;;  %v84_v33 = vld [vmem:[#allocation7 + $0xd8] sm:$0xff] }
  0x3e   :  { %371 = vmatpush3.bf16.msra.mxu0 %v370_v12  ;;  %v403_v31 = vpack.c.bf16 %v65_v29, %v64_v28  ;;  %v66_v34 = vld [vmem:[#allocation7 + $0x50] sm:$0xff]  ;;  %v67_v35 = vld [vmem:[#allocation7 + $0x58] sm:$0xff]  ;;  %v382_v36 = vpack.c.bf16 %v84_v33, %v83_v32  ;;  %v85_v38 = vld [vmem:[#allocation7 + $0xe0] sm:$0xff]  ;;  %p499_p0 = pnand %p498_p13, %p492_p10 }
  0x3f   :  { %395 = vmatpush3.bf16.msra.mxu1 %v394_v13  ;;  %372 = vmatprep.subr.bf16.mxu0 %v524_v0  ;;  %v406_v37 = vpack.c.bf16 %v67_v35, %v66_v34  ;;  %v86_v39 = vld [vmem:[#allocation7 + $0xe8] sm:$0xff]  ;;  %v68_v40 = vld [vmem:[#allocation7 + $0x60] sm:$0xff]  ;;  %v87_v44 = vld [vmem:[#allocation7 + $0xf0] sm:$0xff] }
  0x40   :  { %396 = vmatprep.subr.bf16.mxu1 %v524_v0  ;;  %v69_v41 = vld [vmem:[#allocation7 + $0x68] sm:$0xff]  ;;  %v385_v42 = vpack.c.bf16 %v86_v39, %v85_v38  ;;  %v88_v45 = vld [vmem:[#allocation7 + $0xf8] sm:$0xff]  ;;  %v70_v46 = vld [vmem:[#allocation7 + $0x70] sm:$0xff] }
  0x41   :  { %v409_v43 = vpack.c.bf16 %v69_v41, %v68_v40  ;;  %v71_v47 = vld [vmem:[#allocation7 + $0x78] sm:$0xff]  ;;  %v388_v48 = vpack.c.bf16 %v88_v45, %v87_v44  ;;  %v55_v51 = vld [vmem:[#allocation2] sm:$0xff] }
  0x42   :  { %374 = vmatpush3.bf16.msra.mxu0 %v373_v18  ;;  %v412_v49 = vpack.c.bf16 %v71_v47, %v70_v46  ;;  %v72_v50 = vld [vmem:[#allocation5] sm:$0xff]  ;;  %v261_v55 = vld [vmem:[%s623_s3] ss:$0 sm:$0xff] }
  0x43   :  { %398 = vmatpush3.bf16.msra.mxu1 %v397_v19  ;;  %375 = vmatprep.subr.bf16.mxu0 %v524_v0 }
  0x44   :  { %399 = vmatprep.subr.bf16.mxu1 %v524_v0 }
  0x46   :  { %377 = vmatpush3.bf16.msra.mxu0 %v376_v24 }
  0x47   :  { %401 = vmatpush3.bf16.msra.mxu1 %v400_v25  ;;  %378 = vmatprep.subr.bf16.mxu0 %v524_v0 }
  0x48   :  { %402 = vmatprep.subr.bf16.mxu1 %v524_v0 }
  0x4a   :  { %380 = vmatpush3.bf16.msra.mxu0 %v379_v30 }
  0x4b   :  { %404 = vmatpush3.bf16.msra.mxu1 %v403_v31  ;;  %381 = vmatprep.subr.bf16.mxu0 %v524_v0 }
  0x4c   :  { %405 = vmatprep.subr.bf16.mxu1 %v524_v0 }
  0x4e   :  { %383 = vmatpush3.bf16.msra.mxu0 %v382_v36 }
  0x4f   :  { %407 = vmatpush3.bf16.msra.mxu1 %v406_v37  ;;  %384 = vmatprep.subr.bf16.mxu0 %v524_v0 }
  0x50   :  { %408 = vmatprep.subr.bf16.mxu1 %v524_v0 }
  0x52   :  { %386 = vmatpush3.bf16.msra.mxu0 %v385_v42 }
  0x53   :  { %410 = vmatpush3.bf16.msra.mxu1 %v409_v43  ;;  %387 = vmatprep.subr.bf16.mxu0 %v524_v0 }
  0x54   :  { %411 = vmatprep.subr.bf16.mxu1 %v524_v0 }
  0x56   :  { %389 = vmatpush3.bf16.msra.mxu0 %v388_v48 }
  0x57   :  { %413 = vmatpush3.bf16.msra.mxu1 %v412_v49 }
  0x59   :  { %329 = vmatmul.mubr.f32.vlgmr.msra.gmra.mrb[0].mxu0 %v72_v50 }
  0x5a   :  { %364 = vmatmul.mubr.f32.vlgmr.msra.gmra.mrb[0].mxu1 %v55_v51 }
 0x12c   :  { %v155_v52 = vpop.f32.mrb[0].mxu0 }
 0x12d   :  { %v225_v53 = vpop.f32.mrb[0].mxu1  ;;  %v330_v54 = vpop.f32.mrb[1].mxu0 }
 0x12e   :  { %v226_v56 = vadd.f32 %v225_v53, %v155_v52  ;;  %v365_v57 = vpop.f32.mrb[1].mxu1 }
 0x130   :  { %v236_v58 = vadd.f32 %v261_v55, %v226_v56 }
 0x132   :  { %v237_v59 = vmax.f32 %v236_v58, 0.0 }
 0x134   :  { %v238_v60 = vmul.f32 %v237_v59, %v237_v59 }
 0x136   :  { %239 = vadd.xlane.f32.xlu0 %v238_v60 }
 0x1c3   :  { %v240_v61 = vpop.xlane.xlu0 %239 }
 0x1c4   :  { %v241_v62 = vmax.f32 %v240_v61, 1e-24 }
 0x1c6   :  { %423 = vrsqrt.f32 %v241_v62 }
 0x1d0   :  { %v424_v63 = vpop.eup %423 }
 0x1d1   :  { %v243_v0 = vmul.f32 %v424_v63, %v237_v59 }
 0x1d3   :  { %244 = vst [vmem:[#allocation8] sm:$0xff] %v243_v0 }
 0x1d4   :  { %502 = shalt.err (!%p499_p0)
}
 0x1d5   :  { %s503_s30 = scalar_lea.hbm %s624_s4, 128 }
 0x1d6   :  { %p504_p1 = scmp.ne.s32.totalorder %s624_s4, %s503_s30  ;;  %p507_p2 = scmp.lt.u32.totalorder %s503_s30, %s624_s4 }
 0x1d8   :  { %p509_p3 = pnand %p507_p2, %p504_p1 }
 0x1da   :  { %512 = shalt.err (!%p509_p3)
}
 0x1db   :  { %254 = dma.vmem_to_hbm [thread:$0]  %s252_s27, 128, %s624_s4, [#allocation4]  }
 0x1dc   :  { %517 = dma.done.wait [#allocation4], 128  }
 0x1dd   :  { %518 = vsyncadd [#allocation4], 4294967168 }
 0x1de   :  { %258 = vsyncpa [#allocation3], 1 }
 0x1df   :  { %259 = vsyncpa [#allocation6], 1 }
 0x1e0   :  { %260 = vsyncpa [#allocation4], 1 }

</bundles_post_ra>
